<compile_context>
chip_gen: v7x
topology: tpu7x:2x2x1
jax: 0.10.0
libtpu: 0.0.40
codegen_flags: <defaults>
</compile_context>

<pallas_src>
import functools

import numpy as np
import jax
import jax.numpy as jnp
from jax import lax
from jax.experimental import pallas as pl
from jax.experimental.pallas import tpu as pltpu


def _pick_s_tile(seq_len: int, hidden: int, itemsize: int,
                 target_bytes: int = 2 << 20) -> int:
    """S tile for the (1, ts, H) rel_outputs block.

    Whole S if the tile fits ~target_bytes of VMEM (double-buffered by the
    pipeline, so ~2x that resident); otherwise the largest divisor of S that
    fits and is a multiple of the dtype packing granule (8 for f32, 16 for
    bf16, 32 for int8/fp8).
    """
    if seq_len * hidden * itemsize <= target_bytes:
        return seq_len
    granule = max(8, 32 // max(itemsize, 1))
    cands = [ts for ts in range(granule, seq_len, granule)
             if seq_len % ts == 0 and ts * hidden * itemsize <= target_bytes]
    # Fallback: full-S block is always layout-legal (equals the array dim).
    return max(cands) if cands else seq_len


def _pool_kernel(h_pos_ref, t_pos_ref, outputs_hbm, rel_ref,
                 h_ref, t_ref, rg_ref, rl_ref,
                 h_buf, t_buf, dma_sem):
    b = pl.program_id(0)
    s = pl.program_id(1)
    last_s = pl.num_programs(1) - 1

    rel_tile = rel_ref[...]                               # (1, TS, H)

    @pl.when(s == 0)
    def _():
        # Start the two ~H*4-byte entity-row gathers; they overlap the whole
        # rel stream for this batch element and are only waited at s == last.
        hp = h_pos_ref[b]
        tp = t_pos_ref[b]
        pltpu.make_async_copy(
            outputs_hbm.at[pl.ds(b, 1), pl.ds(hp, 1), :], h_buf, dma_sem.at[0]
        ).start()
        pltpu.make_async_copy(
            outputs_hbm.at[pl.ds(b, 1), pl.ds(tp, 1), :], t_buf, dma_sem.at[1]
        ).start()
        # relation [CLS] token: global sequence position 0 lives in tile s == 0.
        rg_ref[...] = rel_tile[:, 0:1, :]
        # zero the r_local accumulator (output block stays resident across s).
        rl_ref[...] = jnp.zeros_like(rl_ref)

    # Accumulate the sequence sum in f32; divided by S in the head kernel.
    rl_ref[...] += jnp.sum(rel_tile.astype(jnp.float32), axis=1, keepdims=True)

    @pl.when(s == last_s)
    def _():
        # Only shape + semaphore matter for wait(); use fixed position-0 slices
        # so no SMEM scalar read follows the waits (sst->sld forwarding).
        pltpu.make_async_copy(
            outputs_hbm.at[pl.ds(b, 1), pl.ds(0, 1), :], h_buf, dma_sem.at[0]
        ).wait()
        pltpu.make_async_copy(
            outputs_hbm.at[pl.ds(b, 1), pl.ds(0, 1), :], t_buf, dma_sem.at[1]
        ).wait()
        h_ref[...] = h_buf[...]
        t_ref[...] = t_buf[...]


def _head_kernel(h_ref, t_ref, rg_ref, rl_ref, pos_ref, scale_ref, loss_ref,
                 *, seq_len):
    f32 = jnp.float32
    h = h_ref[...].astype(f32)                      # (B, H)
    t = t_ref[...].astype(f32)
    rg = rg_ref[...].astype(f32)
    rl = rl_ref[...].astype(f32) * (1.0 / seq_len)  # sequence mean
    pos = pos_ref[...]                              # (B, B) f32
    batch = pos.shape[0]

    # H is a multiple of 128 so the lane-axis concat is a cheap layout op; one
    # K=2H MXU contraction instead of two K=H pushes (latency-bound at small B).
    e = jnp.concatenate([h, t], axis=1)             # (B, 2H)
    r = jnp.concatenate([rg, rl], axis=1)           # (B, 2H)

    # L2 normalize; exp(logit_scale) (SMEM scalar) folded into the entity norm
    # so no (B, B) scaling multiply is needed.  Tiny eps guards a zero row
    # (the torch reference would produce NaN there).
    ls = scale_ref[0]
    e_inv = ls * lax.rsqrt(jnp.sum(e * e, axis=1, keepdims=True) + 1e-12)
    r_inv = lax.rsqrt(jnp.sum(r * r, axis=1, keepdims=True) + 1e-12)
    en = e * e_inv
    rn = r * r_inv

    dn = (((1,), (1,)), ((), ()))                   # contract the 2H axes
    logits = lax.dot_general(en, rn, dn, preferred_element_type=f32)   # (B, B)

    # Entity loss: row log-softmax (dim=1), target = pos.
    m1 = jnp.max(logits, axis=1, keepdims=True)
    lse1 = m1 + jnp.log(jnp.sum(jnp.exp(logits - m1), axis=1, keepdims=True))
    per_row = jnp.sum(pos * (logits - lse1), axis=1, keepdims=True)     # (B, 1)
    loss_entity = -jnp.sum(per_row, axis=0, keepdims=True) * (1.0 / batch)

    # Relation loss: logits_per_relation = logits.T with target pos.T, i.e. a
    # column log-softmax of the same logits — no second matmul / transpose.
    m0 = jnp.max(logits, axis=0, keepdims=True)
    lse0 = m0 + jnp.log(jnp.sum(jnp.exp(logits - m0), axis=0, keepdims=True))
    per_col = jnp.sum(pos * (logits - lse0), axis=0, keepdims=True)     # (1, B)
    loss_relation = -jnp.sum(per_col, axis=1, keepdims=True) * (1.0 / batch)

    loss_ref[...] = 0.5 * (loss_entity + loss_relation)


@jax.jit
def cp_contrastive_head(outputs, rel_outputs, h_pos, t_pos, pos, logit_scale):
    B, S, H = outputs.shape
    ts = _pick_s_tile(S, H, jnp.dtype(rel_outputs.dtype).itemsize)
    h_pos = h_pos.reshape(B).astype(jnp.int32)
    t_pos = t_pos.reshape(B).astype(jnp.int32)

    vmem = pltpu.MemorySpace.VMEM
    smem = pltpu.MemorySpace.SMEM

    # Kernel 1: stream rel_outputs in (1, ts, H) tiles with a resident f32
    # sequence-sum accumulator, and DMA-gather only the two entity rows of
    # `outputs` (which stays in HBM) per batch element.
    h_state, t_state, r_global, r_local_sum = pl.pallas_call(
        _pool_kernel,
        grid=(B, S // ts),
        in_specs=[
            pl.BlockSpec(memory_space=smem),                    # h_pos (B,)
            pl.BlockSpec(memory_space=smem),                    # t_pos (B,)
            pl.BlockSpec(memory_space=pl.ANY),                  # outputs (HBM)
            pl.BlockSpec((1, ts, H), lambda b, s: (b, s, 0)),   # rel_outputs tile
        ],
        out_specs=[
            pl.BlockSpec((1, 1, H), lambda b, s: (b, 0, 0)),    # h_state
            pl.BlockSpec((1, 1, H), lambda b, s: (b, 0, 0)),    # t_state
            pl.BlockSpec((1, 1, H), lambda b, s: (b, 0, 0)),    # r_global ([CLS])
            pl.BlockSpec((1, 1, H), lambda b, s: (b, 0, 0)),    # r_local sum (f32)
        ],
        out_shape=(
            jax.ShapeDtypeStruct((B, 1, H), outputs.dtype),
            jax.ShapeDtypeStruct((B, 1, H), outputs.dtype),
            jax.ShapeDtypeStruct((B, 1, H), rel_outputs.dtype),
            jax.ShapeDtypeStruct((B, 1, H), jnp.float32),
        ),
        scratch_shapes=[
            pltpu.VMEM((1, 1, H), outputs.dtype),
            pltpu.VMEM((1, 1, H), outputs.dtype),
            pltpu.SemaphoreType.DMA((2,)),
        ],
        compiler_params=pltpu.CompilerParams(
            dimension_semantics=("parallel", "arbitrary")),
    )(h_pos, t_pos, outputs, rel_outputs)

    # Kernel 2: un-gridded contrastive head over (B, H)/(B, B) tensors.
    # TODO(synk): for production contrastive batch sizes (B in the thousands,
    # H=768/1024) tile this over B-row blocks (online column reduction for the
    # relation loss) — the flat-in-VMEM form is sized for small/medium B and
    # v7x's 64 MiB VMEM.
    ls = jnp.exp(logit_scale).reshape(1).astype(jnp.float32)   # exp folded outside
    loss = pl.pallas_call(
        functools.partial(_head_kernel, seq_len=S),
        out_shape=jax.ShapeDtypeStruct((1, 1), jnp.float32),
        in_specs=[
            pl.BlockSpec(memory_space=vmem),   # h_state   (B, H)
            pl.BlockSpec(memory_space=vmem),   # t_state   (B, H)
            pl.BlockSpec(memory_space=vmem),   # r_global  (B, H)
            pl.BlockSpec(memory_space=vmem),   # r_local sum (B, H)
            pl.BlockSpec(memory_space=vmem),   # pos (B, B)
            pl.BlockSpec(memory_space=smem),   # exp(logit_scale) (1,)
        ],
        out_specs=pl.BlockSpec(memory_space=vmem),
    )(h_state.reshape(B, H), t_state.reshape(B, H),
      r_global.reshape(B, H), r_local_sum.reshape(B, H),
      pos.astype(jnp.float32), ls)
    return loss[0, 0]


def build_pos_matrix(input_ids_np, rel_input_np):
    """Replicates the numpy/torch block-diagonal positive-pair matrix glue from
    CP.forward: lexsort by rel_input rows, group identical input rows."""
    B = rel_input_np.shape[0]
    sorted_idx = np.lexsort(tuple(rel_input_np.T))
    new_input = input_ids_np[sorted_idx]
    _, indices = np.unique(new_input, axis=0, return_inverse=True)
    counts = np.bincount(indices)
    pos = np.zeros((B, B), dtype=np.float32)
    cur = 0
    for c in counts.tolist():
        pos[cur:cur + c, cur:cur + c] = 1.0
        cur += c
    return pos


def reference_loss(outputs, rel_outputs, h_pos, t_pos, pos, logit_scale):
    """Pure-JAX mirror of the torch contrastive head (for correctness check)."""
    B = outputs.shape[0]
    idx = jnp.arange(B)
    h_state = outputs[idx, h_pos]
    t_state = outputs[idx, t_pos]
    r_global = rel_outputs[:, 0, :]
    r_local = jnp.mean(rel_outputs, axis=1)
    e_state = jnp.concatenate([h_state, t_state], axis=1)
    r_state = jnp.concatenate([r_global, r_local], axis=1)
    e_state = e_state / jnp.linalg.norm(e_state, axis=1, keepdims=True)
    r_state = r_state / jnp.linalg.norm(r_state, axis=1, keepdims=True)
    logits = jnp.exp(logit_scale) * (e_state @ r_state.T)

    def ohce(x, y):
        p = jax.nn.softmax(x, axis=1)
        return -jnp.mean(jnp.sum(y * jnp.log(p + 1e-7), axis=1))

    return 0.5 * (ohce(logits, pos) + ohce(logits.T, pos.T))


if __name__ == "__main__":
    # Small shapes: batch B=8, seq S=16, hidden H=128 (BERT hidden surrogate).
    B, S, H = 8, 16, 128

    key = jax.random.PRNGKey(0)
    k1, k2, k3, k4, k5, k6 = jax.random.split(key, 6)

    # Synthetic token-id batches with repeated rows so the positive matrix has
    # non-trivial block structure.
    n_groups = 3
    group_assign = np.array([0, 0, 0, 1, 1, 2, 2, 2])
    unique_inp = np.asarray(jax.random.randint(k1, (n_groups, S), 0, 1000))
    unique_rel = np.asarray(jax.random.randint(k2, (n_groups, S), 0, 1000))
    input_ids_np = unique_inp[group_assign]
    rel_input_np = unique_rel[group_assign]

    # TODO(synk): BertForMaskedLM encoders + mask_tokens (MLM losses m_loss,
    # m_rel_loss) have no Pallas equivalent; encoder last-hidden-states are
    # replaced by deterministic random tensors.
    outputs = jax.random.normal(k3, (B, S, H), jnp.float32)       # model hidden states
    rel_outputs = jax.random.normal(k4, (B, S, H), jnp.float32)   # model2 hidden states
    h_pos = jax.random.randint(k5, (B,), 0, S)
    t_pos = jax.random.randint(k6, (B,), 0, S)

    # TODO(synk): original forward references an undefined `final_pos`; the
    # block-diagonal `pos` matrix it constructs is used as the target instead.
    pos = jnp.asarray(build_pos_matrix(input_ids_np, rel_input_np))

    # Deterministic parameter init from __init__: logit_scale = log(1/0.07).
    logit_scale = jnp.array(np.log(1.0 / 0.07), dtype=jnp.float32)

    r_loss = cp_contrastive_head(outputs, rel_outputs, h_pos, t_pos, pos, logit_scale)
    jax.block_until_ready(r_loss)

    ref = reference_loss(outputs, rel_outputs, h_pos, t_pos, pos, logit_scale)
    # Tolerance covers the intentional kernel deviations from the torch form:
    # direct log-softmax (no +1e-7 inside log) and the 1e-12 eps inside rsqrt.
    np.testing.assert_allclose(np.asarray(r_loss), np.asarray(ref),
                               rtol=2e-4, atol=2e-4)
    assert np.isfinite(np.asarray(r_loss)), "loss is not finite"
    print("KERNEL_OK")
</pallas_src>

<mosaic_0001>
module attributes {stable_mosaic.version = 11 : i64} {
  func.func @_head_kernel(%arg0: memref<8x128xf32, #tpu.memory_space<vmem>>, %arg1: memref<8x128xf32, #tpu.memory_space<vmem>>, %arg2: memref<8x128xf32, #tpu.memory_space<vmem>>, %arg3: memref<8x128xf32, #tpu.memory_space<vmem>>, %arg4: memref<8x8xf32, #tpu.memory_space<vmem>>, %arg5: memref<1xf32, #tpu.memory_space<smem>>, %arg6: memref<1x1xf32, #tpu.memory_space<vmem>>) attributes {dimension_semantics = [], scalar_prefetch = 0 : i64, scratch_operands = 0 : i64, tpu.core_type = #tpu.core_type<tc>} {
    %c0 = arith.constant 0 : index
    %c0_0 = arith.constant 0 : index
    %0 = vector.load %arg0[%c0, %c0_0] : memref<8x128xf32, #tpu.memory_space<vmem>>, vector<8x128xf32>
    %c0_1 = arith.constant 0 : index
    %c0_2 = arith.constant 0 : index
    %1 = vector.load %arg1[%c0_1, %c0_2] : memref<8x128xf32, #tpu.memory_space<vmem>>, vector<8x128xf32>
    %c0_3 = arith.constant 0 : index
    %c0_4 = arith.constant 0 : index
    %2 = vector.load %arg2[%c0_3, %c0_4] : memref<8x128xf32, #tpu.memory_space<vmem>>, vector<8x128xf32>
    %c0_5 = arith.constant 0 : index
    %c0_6 = arith.constant 0 : index
    %3 = vector.load %arg3[%c0_5, %c0_6] : memref<8x128xf32, #tpu.memory_space<vmem>>, vector<8x128xf32>
    %cst = arith.constant 6.250000e-02 : f32
    %4 = vector.broadcast %cst : f32 to vector<8x128xf32>
    %5 = arith.mulf %3, %4 : vector<8x128xf32>
    %c0_7 = arith.constant 0 : index
    %c0_8 = arith.constant 0 : index
    %6 = vector.load %arg4[%c0_7, %c0_8] : memref<8x8xf32, #tpu.memory_space<vmem>>, vector<8x8xf32>
    %7 = tpu.concatenate %0, %1 in 1 : vector<8x128xf32>, vector<8x128xf32> -> vector<8x256xf32>
    %8 = tpu.concatenate %2, %5 in 1 : vector<8x128xf32>, vector<8x128xf32> -> vector<8x256xf32>
    %c0_9 = arith.constant 0 : index
    %9 = memref.load %arg5[%c0_9] : memref<1xf32, #tpu.memory_space<smem>>
    %10 = arith.mulf %7, %7 : vector<8x256xf32>
    %cst_10 = arith.constant dense<0.000000e+00> : vector<8xf32>
    %11 = vector.multi_reduction <add>, %10, %cst_10 [1] : vector<8x256xf32> to vector<8xf32>
    %12 = vector.shape_cast %11 : vector<8xf32> to vector<8x1xf32>
    %cst_11 = arith.constant 9.99999996E-13 : f32
    %13 = vector.broadcast %cst_11 : f32 to vector<8x1xf32>
    %14 = arith.addf %12, %13 : vector<8x1xf32>
    %15 = math.rsqrt %14 : vector<8x1xf32>
    %16 = vector.broadcast %9 : f32 to vector<8x1xf32>
    %17 = arith.mulf %16, %15 : vector<8x1xf32>
    %18 = arith.mulf %8, %8 : vector<8x256xf32>
    %cst_12 = arith.constant dense<0.000000e+00> : vector<8xf32>
    %19 = vector.multi_reduction <add>, %18, %cst_12 [1] : vector<8x256xf32> to vector<8xf32>
    %20 = vector.shape_cast %19 : vector<8xf32> to vector<8x1xf32>
    %cst_13 = arith.constant 9.99999996E-13 : f32
    %21 = vector.broadcast %cst_13 : f32 to vector<8x1xf32>
    %22 = arith.addf %20, %21 : vector<8x1xf32>
    %23 = math.rsqrt %22 : vector<8x1xf32>
    %24 = vector.broadcast %17 : vector<8x1xf32> to vector<8x256xf32>
    %25 = arith.mulf %7, %24 : vector<8x256xf32>
    %26 = vector.broadcast %23 : vector<8x1xf32> to vector<8x256xf32>
    %27 = arith.mulf %8, %26 : vector<8x256xf32>
    %cst_14 = arith.constant dense<0.000000e+00> : vector<8x8xf32>
    %28 = tpu.matmul %25, %27, %cst_14 {dimension_numbers = #tpu.dot_dimension_numbers<[1], [1], [0], [0], [0, 0, 1, 0], [], []>} : vector<8x256xf32>, vector<8x256xf32>, vector<8x8xf32> -> vector<8x8xf32>
    %cst_15 = arith.constant dense<0xFF800000> : vector<8xf32>
    %29 = vector.multi_reduction <maximumf>, %28, %cst_15 [1] : vector<8x8xf32> to vector<8xf32>
    %30 = vector.shape_cast %29 : vector<8xf32> to vector<8x1xf32>
    %31 = vector.broadcast %30 : vector<8x1xf32> to vector<8x8xf32>
    %32 = arith.subf %28, %31 : vector<8x8xf32>
    %33 = math.exp %32 : vector<8x8xf32>
    %cst_16 = arith.constant dense<0.000000e+00> : vector<8xf32>
    %34 = vector.multi_reduction <add>, %33, %cst_16 [1] : vector<8x8xf32> to vector<8xf32>
    %35 = vector.shape_cast %34 : vector<8xf32> to vector<8x1xf32>
    %36 = math.log %35 : vector<8x1xf32>
    %37 = arith.addf %30, %36 : vector<8x1xf32>
    %38 = vector.broadcast %37 : vector<8x1xf32> to vector<8x8xf32>
    %39 = arith.subf %28, %38 : vector<8x8xf32>
    %40 = arith.mulf %6, %39 : vector<8x8xf32>
    %cst_17 = arith.constant dense<0.000000e+00> : vector<8xf32>
    %41 = vector.multi_reduction <add>, %40, %cst_17 [1] : vector<8x8xf32> to vector<8xf32>
    %42 = vector.shape_cast %41 : vector<8xf32> to vector<8x1xf32>
    %cst_18 = arith.constant dense<0.000000e+00> : vector<1xf32>
    %43 = vector.multi_reduction <add>, %42, %cst_18 [0] : vector<8x1xf32> to vector<1xf32>
    %44 = vector.shape_cast %43 : vector<1xf32> to vector<1x1xf32>
    %cst_19 = arith.constant 0.000000e+00 : f32
    %45 = vector.broadcast %cst_19 : f32 to vector<1x1xf32>
    %46 = arith.subf %45, %44 : vector<1x1xf32>
    %cst_20 = arith.constant 1.250000e-01 : f32
    %47 = vector.broadcast %cst_20 : f32 to vector<1x1xf32>
    %48 = arith.mulf %46, %47 : vector<1x1xf32>
    %cst_21 = arith.constant dense<0xFF800000> : vector<8xf32>
    %49 = vector.multi_reduction <maximumf>, %28, %cst_21 [0] : vector<8x8xf32> to vector<8xf32>
    %50 = vector.shape_cast %49 : vector<8xf32> to vector<1x8xf32>
    %51 = vector.broadcast %50 : vector<1x8xf32> to vector<8x8xf32>
    %52 = arith.subf %28, %51 : vector<8x8xf32>
    %53 = math.exp %52 : vector<8x8xf32>
    %cst_22 = arith.constant dense<0.000000e+00> : vector<8xf32>
    %54 = vector.multi_reduction <add>, %53, %cst_22 [0] : vector<8x8xf32> to vector<8xf32>
    %55 = vector.shape_cast %54 : vector<8xf32> to vector<1x8xf32>
    %56 = math.log %55 : vector<1x8xf32>
    %57 = arith.addf %50, %56 : vector<1x8xf32>
    %58 = vector.broadcast %57 : vector<1x8xf32> to vector<8x8xf32>
    %59 = arith.subf %28, %58 : vector<8x8xf32>
    %60 = arith.mulf %6, %59 : vector<8x8xf32>
    %cst_23 = arith.constant dense<0.000000e+00> : vector<8xf32>
    %61 = vector.multi_reduction <add>, %60, %cst_23 [0] : vector<8x8xf32> to vector<8xf32>
    %62 = vector.shape_cast %61 : vector<8xf32> to vector<1x8xf32>
    %cst_24 = arith.constant dense<0.000000e+00> : vector<1xf32>
    %63 = vector.multi_reduction <add>, %62, %cst_24 [1] : vector<1x8xf32> to vector<1xf32>
    %64 = vector.shape_cast %63 : vector<1xf32> to vector<1x1xf32>
    %cst_25 = arith.constant 0.000000e+00 : f32
    %65 = vector.broadcast %cst_25 : f32 to vector<1x1xf32>
    %66 = arith.subf %65, %64 : vector<1x1xf32>
    %cst_26 = arith.constant 1.250000e-01 : f32
    %67 = vector.broadcast %cst_26 : f32 to vector<1x1xf32>
    %68 = arith.mulf %66, %67 : vector<1x1xf32>
    %69 = arith.addf %48, %68 : vector<1x1xf32>
    %cst_27 = arith.constant 5.000000e-01 : f32
    %70 = vector.broadcast %cst_27 : f32 to vector<1x1xf32>
    %71 = arith.mulf %70, %69 : vector<1x1xf32>
    %c0_28 = arith.constant 0 : index
    %c0_29 = arith.constant 0 : index
    %72 = vector.load %arg6[%c0_28, %c0_29] : memref<1x1xf32, #tpu.memory_space<vmem>>, vector<1x1xf32>
    tpu.vector_store %arg6[%c0_28, %c0_29], %71 {strides = array<i32>} : memref<1x1xf32, #tpu.memory_space<vmem>>, vector<1x1xf32>,
    return
  }
}

module attributes {stable_mosaic.version = 11 : i64} {
  func.func @_pool_kernel(%arg0: i32, %arg1: i32, %arg2: memref<8xi32, #tpu.memory_space<smem>>, %arg3: memref<8xi32, #tpu.memory_space<smem>>, %arg4: memref<8x16x128xf32, #tpu.memory_space<any>>, %arg5: memref<1x16x128xf32, #tpu.memory_space<vmem>>, %arg6: memref<1x1x128xf32, #tpu.memory_space<vmem>>, %arg7: memref<1x1x128xf32, #tpu.memory_space<vmem>>, %arg8: memref<1x1x128xf32, #tpu.memory_space<vmem>>, %arg9: memref<1x1x128xf32, #tpu.memory_space<vmem>>, %arg10: memref<1x1x128xf32, #tpu.memory_space<vmem>>, %arg11: memref<1x1x128xf32, #tpu.memory_space<vmem>>, %arg12: memref<2x!tpu.dma_semaphore, #tpu.memory_space<semaphore_mem>>) attributes {dimension_semantics = [#tpu.dimension_semantics<parallel>, #tpu.dimension_semantics<arbitrary>], iteration_bounds = array<i64: 8, 1>, scalar_prefetch = 0 : i64, scratch_operands = 3 : i64, tpu.core_type = #tpu.core_type<tc>, window_params = [{transform_indices = @transform_0, window_bounds = array<i64: 8>}, {transform_indices = @transform_1, window_bounds = array<i64: 8>}, {}, {transform_indices = @transform_3, window_bounds = array<i64: 1, 16, 128>}, {transform_indices = @transform_4, window_bounds = array<i64: 1, 1, 128>}, {transform_indices = @transform_5, window_bounds = array<i64: 1, 1, 128>}, {transform_indices = @transform_6, window_bounds = array<i64: 1, 1, 128>}, {transform_indices = @transform_7, window_bounds = array<i64: 1, 1, 128>}]} {
    %c0 = arith.constant 0 : index
    %c0_0 = arith.constant 0 : index
    %c0_1 = arith.constant 0 : index
    %0 = vector.load %arg5[%c0, %c0_0, %c0_1] : memref<1x16x128xf32, #tpu.memory_space<vmem>>, vector<1x16x128xf32>
    %c0_i32 = arith.constant 0 : i32
    %1 = arith.cmpi eq, %arg1, %c0_i32 : i32
    %2 = arith.extui %1 : i1 to i32
    %c0_i32_2 = arith.constant 0 : i32
    %3 = arith.cmpi ne, %2, %c0_i32_2 : i32
    scf.if %3 {
      %12 = arith.index_cast %arg0 : i32 to index
      %13 = memref.load %arg2[%12] : memref<8xi32, #tpu.memory_space<smem>>
      %14 = arith.index_cast %arg0 : i32 to index
      %15 = memref.load %arg3[%14] : memref<8xi32, #tpu.memory_space<smem>>
      %c0_i32_11 = arith.constant 0 : i32
      %c0_i32_12 = arith.constant 0 : i32
      %16 = tpu.memref_slice %arg4[%arg0, %13, %c0_i32_12] : memref<8x16x128xf32, #tpu.memory_space<any>> -> memref<1x1x128xf32, #tpu.memory_space<any>>
      %17 = tpu.memref_slice %arg12[%c0_i32_11] : memref<2x!tpu.dma_semaphore, #tpu.memory_space<semaphore_mem>> -> memref<1x!tpu.dma_semaphore, #tpu.memory_space<semaphore_mem>>
      %18 = tpu.memref_squeeze %17 : memref<1x!tpu.dma_semaphore, #tpu.memory_space<semaphore_mem>> -> memref<!tpu.dma_semaphore, #tpu.memory_space<semaphore_mem>>
      tpu.enqueue_dma source(%16 : memref<1x1x128xf32, #tpu.memory_space<any>>) target(%arg10 : memref<1x1x128xf32, #tpu.memory_space<vmem>>) target_semaphore(%18 : memref<!tpu.dma_semaphore, #tpu.memory_space<semaphore_mem>>)
      %c1_i32 = arith.constant 1 : i32
      %c0_i32_13 = arith.constant 0 : i32
      %19 = tpu.memref_slice %arg4[%arg0, %15, %c0_i32_13] : memref<8x16x128xf32, #tpu.memory_space<any>> -> memref<1x1x128xf32, #tpu.memory_space<any>>
      %20 = tpu.memref_slice %arg12[%c1_i32] : memref<2x!tpu.dma_semaphore, #tpu.memory_space<semaphore_mem>> -> memref<1x!tpu.dma_semaphore, #tpu.memory_space<semaphore_mem>>
      %21 = tpu.memref_squeeze %20 : memref<1x!tpu.dma_semaphore, #tpu.memory_space<semaphore_mem>> -> memref<!tpu.dma_semaphore, #tpu.memory_space<semaphore_mem>>
      tpu.enqueue_dma source(%19 : memref<1x1x128xf32, #tpu.memory_space<any>>) target(%arg11 : memref<1x1x128xf32, #tpu.memory_space<vmem>>) target_semaphore(%21 : memref<!tpu.dma_semaphore, #tpu.memory_space<semaphore_mem>>)
      %22 = vector.extract_strided_slice %0 {offsets = [0, 0, 0], sizes = [1, 1, 128], strides = [1, 1, 1]} : vector<1x16x128xf32> to vector<1x1x128xf32>
      %c0_14 = arith.constant 0 : index
      %c0_15 = arith.constant 0 : index
      %c0_16 = arith.constant 0 : index
      %23 = vector.load %arg8[%c0_14, %c0_15, %c0_16] : memref<1x1x128xf32, #tpu.memory_space<vmem>>, vector<1x1x128xf32>
      tpu.vector_store %arg8[%c0_14, %c0_15, %c0_16], %22 {strides = array<i32>} : memref<1x1x128xf32, #tpu.memory_space<vmem>>, vector<1x1x128xf32>,
      %cst_17 = arith.constant 0.000000e+00 : f32
      %24 = vector.broadcast %cst_17 : f32 to vector<1x1x128xf32>
      %c0_18 = arith.constant 0 : index
      %c0_19 = arith.constant 0 : index
      %c0_20 = arith.constant 0 : index
      %25 = vector.load %arg9[%c0_18, %c0_19, %c0_20] : memref<1x1x128xf32, #tpu.memory_space<vmem>>, vector<1x1x128xf32>
      tpu.vector_store %arg9[%c0_18, %c0_19, %c0_20], %24 {strides = array<i32>} : memref<1x1x128xf32, #tpu.memory_space<vmem>>, vector<1x1x128xf32>,
    } else {
    }
    %c0_3 = arith.constant 0 : index
    %c0_4 = arith.constant 0 : index
    %c0_5 = arith.constant 0 : index
    %4 = vector.load %arg9[%c0_3, %c0_4, %c0_5] : memref<1x1x128xf32, #tpu.memory_space<vmem>>, vector<1x1x128xf32>
    %cst = arith.constant dense<0.000000e+00> : vector<1x128xf32>
    %5 = vector.multi_reduction <add>, %0, %cst [1] : vector<1x16x128xf32> to vector<1x128xf32>
    %6 = vector.shape_cast %5 : vector<1x128xf32> to vector<1x1x128xf32>
    %7 = arith.addf %4, %6 : vector<1x1x128xf32>
    %c0_6 = arith.constant 0 : index
    %c0_7 = arith.constant 0 : index
    %c0_8 = arith.constant 0 : index
    %8 = vector.load %arg9[%c0_6, %c0_7, %c0_8] : memref<1x1x128xf32, #tpu.memory_space<vmem>>, vector<1x1x128xf32>
    tpu.vector_store %arg9[%c0_6, %c0_7, %c0_8], %7 {strides = array<i32>} : memref<1x1x128xf32, #tpu.memory_space<vmem>>, vector<1x1x128xf32>,
    %c0_i32_9 = arith.constant 0 : i32
    %9 = arith.cmpi eq, %arg1, %c0_i32_9 : i32
    %10 = arith.extui %9 : i1 to i32
    %c0_i32_10 = arith.constant 0 : i32
    %11 = arith.cmpi ne, %10, %c0_i32_10 : i32
    scf.if %11 {
      %c0_i32_11 = arith.constant 0 : i32
      %c0_i32_12 = arith.constant 0 : i32
      %c0_i32_13 = arith.constant 0 : i32
      %12 = tpu.memref_slice %arg4[%arg0, %c0_i32_12, %c0_i32_13] : memref<8x16x128xf32, #tpu.memory_space<any>> -> memref<1x1x128xf32, #tpu.memory_space<any>>
      %13 = tpu.memref_slice %arg12[%c0_i32_11] : memref<2x!tpu.dma_semaphore, #tpu.memory_space<semaphore_mem>> -> memref<1x!tpu.dma_semaphore, #tpu.memory_space<semaphore_mem>>
      %14 = tpu.memref_squeeze %13 : memref<1x!tpu.dma_semaphore, #tpu.memory_space<semaphore_mem>> -> memref<!tpu.dma_semaphore, #tpu.memory_space<semaphore_mem>>
      tpu.wait_dma2 semaphore(%14 : memref<!tpu.dma_semaphore, #tpu.memory_space<semaphore_mem>>) src(%12 : memref<1x1x128xf32, #tpu.memory_space<any>>) dst(%arg10 : memref<1x1x128xf32, #tpu.memory_space<vmem>>)
      %c1_i32 = arith.constant 1 : i32
      %c0_i32_14 = arith.constant 0 : i32
      %c0_i32_15 = arith.constant 0 : i32
      %15 = tpu.memref_slice %arg4[%arg0, %c0_i32_14, %c0_i32_15] : memref<8x16x128xf32, #tpu.memory_space<any>> -> memref<1x1x128xf32, #tpu.memory_space<any>>
      %16 = tpu.memref_slice %arg12[%c1_i32] : memref<2x!tpu.dma_semaphore, #tpu.memory_space<semaphore_mem>> -> memref<1x!tpu.dma_semaphore, #tpu.memory_space<semaphore_mem>>
      %17 = tpu.memref_squeeze %16 : memref<1x!tpu.dma_semaphore, #tpu.memory_space<semaphore_mem>> -> memref<!tpu.dma_semaphore, #tpu.memory_space<semaphore_mem>>
      tpu.wait_dma2 semaphore(%17 : memref<!tpu.dma_semaphore, #tpu.memory_space<semaphore_mem>>) src(%15 : memref<1x1x128xf32, #tpu.memory_space<any>>) dst(%arg11 : memref<1x1x128xf32, #tpu.memory_space<vmem>>)
      %c0_16 = arith.constant 0 : index
      %c0_17 = arith.constant 0 : index
      %c0_18 = arith.constant 0 : index
      %18 = vector.load %arg10[%c0_16, %c0_17, %c0_18] : memref<1x1x128xf32, #tpu.memory_space<vmem>>, vector<1x1x128xf32>
      %c0_19 = arith.constant 0 : index
      %c0_20 = arith.constant 0 : index
      %c0_21 = arith.constant 0 : index
      %19 = vector.load %arg6[%c0_19, %c0_20, %c0_21] : memref<1x1x128xf32, #tpu.memory_space<vmem>>, vector<1x1x128xf32>
      tpu.vector_store %arg6[%c0_19, %c0_20, %c0_21], %18 {strides = array<i32>} : memref<1x1x128xf32, #tpu.memory_space<vmem>>, vector<1x1x128xf32>,
      %c0_22 = arith.constant 0 : index
      %c0_23 = arith.constant 0 : index
      %c0_24 = arith.constant 0 : index
      %20 = vector.load %arg11[%c0_22, %c0_23, %c0_24] : memref<1x1x128xf32, #tpu.memory_space<vmem>>, vector<1x1x128xf32>
      %c0_25 = arith.constant 0 : index
      %c0_26 = arith.constant 0 : index
      %c0_27 = arith.constant 0 : index
      %21 = vector.load %arg7[%c0_25, %c0_26, %c0_27] : memref<1x1x128xf32, #tpu.memory_space<vmem>>, vector<1x1x128xf32>
      tpu.vector_store %arg7[%c0_25, %c0_26, %c0_27], %20 {strides = array<i32>} : memref<1x1x128xf32, #tpu.memory_space<vmem>>, vector<1x1x128xf32>,
    } else {
    }
    return
  }
  func.func @transform_0(%arg0: i32, %arg1: i32) -> i32 {
    %c0_i32 = arith.constant 0 : i32
    %c0_i32_0 = arith.constant 0 : i32
    return %c0_i32 : i32
  }
  func.func @transform_1(%arg0: i32, %arg1: i32) -> i32 {
    %c0_i32 = arith.constant 0 : i32
    %c0_i32_0 = arith.constant 0 : i32
    return %c0_i32 : i32
  }
  func.func @transform_3(%arg0: i32, %arg1: i32) -> (i32, i32, i32) {
    %c0_i32 = arith.constant 0 : i32
    %c0_i32_0 = arith.constant 0 : i32
    return %arg0, %arg1, %c0_i32 : i32, i32, i32
  }
  func.func @transform_4(%arg0: i32, %arg1: i32) -> (i32, i32, i32) {
    %c0_i32 = arith.constant 0 : i32
    %c0_i32_0 = arith.constant 0 : i32
    %c0_i32_1 = arith.constant 0 : i32
    return %arg0, %c0_i32, %c0_i32_0 : i32, i32, i32
  }
  func.func @transform_5(%arg0: i32, %arg1: i32) -> (i32, i32, i32) {
    %c0_i32 = arith.constant 0 : i32
    %c0_i32_0 = arith.constant 0 : i32
    %c0_i32_1 = arith.constant 0 : i32
    return %arg0, %c0_i32, %c0_i32_0 : i32, i32, i32
  }
  func.func @transform_6(%arg0: i32, %arg1: i32) -> (i32, i32, i32) {
    %c0_i32 = arith.constant 0 : i32
    %c0_i32_0 = arith.constant 0 : i32
    %c0_i32_1 = arith.constant 0 : i32
    return %arg0, %c0_i32, %c0_i32_0 : i32, i32, i32
  }
  func.func @transform_7(%arg0: i32, %arg1: i32) -> (i32, i32, i32) {
    %c0_i32 = arith.constant 0 : i32
    %c0_i32_0 = arith.constant 0 : i32
    %c0_i32_1 = arith.constant 0 : i32
    return %arg0, %c0_i32, %c0_i32_0 : i32, i32, i32
  }
}

</mosaic_0001>

<bundles_post_ra>
// kernel: cp_contrastive_head.2
= control target key start
LH: loop header
LB: loop body
LE: loop exit
PB: predicated region body
PF: predicated region fallthrough
CT: control target
= control target key end

     0   :  { %s1134_s0 = inlined_call_operand.vmem [shape: s32[8], index: 0, kind: input, shape index: {}]   ;;  %s1135_s1 = inlined_call_operand.vmem [shape: s32[8], index: 1, kind: input, shape index: {}]   ;;  %s1136_s2 = inlined_call_operand.hbm [shape: f32[8,16,128], index: 2, kind: input, shape index: {}]   ;;  %s1137_s3 = inlined_call_operand.hbm [shape: f32[8,16,128], index: 3, kind: input, shape index: {}]   ;;  %s1138_s4 = inlined_call_operand.vmem [shape: f32[8,1,128], index: 4, kind: output, shape index: {0}]   ;;  %s1139_s5 = inlined_call_operand.vmem [shape: f32[8,1,128], index: 5, kind: output, shape index: {1}]   ;;  %s1140_s6 = inlined_call_operand.vmem [shape: f32[8,1,128], index: 6, kind: output, shape index: {2}]   ;;  %s1141_s7 = inlined_call_operand.vmem [shape: f32[8,1,128], index: 7, kind: output, shape index: {3}]  }
   0x1   :  { %1147 = sst [smem:[#allocation22_spill]] %s1134_s0 }
   0x2   :  { %1148 = sst [smem:[#allocation23_spill]] %s1135_s1 }
   0x3   :  { %1149 = sst [smem:[#allocation24_spill]] %s1137_s3 }
   0x4   :  { %13 = vsyncpa [#allocation7], 0 }
   0x5   :  { %14 = vsyncpa [#allocation9], 0 }
   0x6   :  { %15 = vsyncpa [#allocation6], 0 }
   0x7   :  { %17 = vsyncpa [#allocation6 + $0x1], 0  ;;  %s912_s24 = smov 0   ;;  %s914_s25 = smov 0  }
   0x8   :  { %s916_s26 = smov 0   ;;  %s918_s27 = smov 0  }
   0x9   :  { %s920_s28 = smov 0   ;;  %s922_s29 = smov 0  }
   0xa LB: > { %s590_s30 = sadd.s32 4294967295, %s862_s29   ;;  %s86_s8 = sadd.s32 1, %s850_s26  ;;  %s862_s29 = sphi %s922_s29, %s23_s29   ;;  %s858_s28 = sphi %s920_s28, %s1168_s28   ;;  %s854_s27 = sphi %s918_s27, %s1167_s27   ;;  %s850_s26 = sphi %s916_s26, %s1166_s26   ;;  %s846_s25 = sphi %s914_s25, %s1165_s25   ;;  %s842_s24 = sphi %s912_s24, %s1164_s24  }
   0xb   : > { %p93_p0 = scmp.ne.s32.totalorder %s850_s26, %s846_s25  ;;  %p94_p1 = scmp.eq.s32.totalorder %s862_s29, 0 }
   0xc   : > { %p99_p2 = scmp.ne.s32.totalorder %s846_s25, %s842_s24  ;;  %p946_p3 = scmp.eq.s32.totalorder %s590_s30, 0 }
   0xd   : > { %p95_p4 = por %p94_p1, %p93_p0  ;;  %p592_p5 = scmp.ge.s32.totalorder %s862_s29, 1 }
   0xe   : > { %s1150_s9 = scalar_select %p946_p3, 1, 0 }
   0xf   : > { %p953_p6 = por %p946_p3, %p99_p2  ;;  %p214_p7 = scmp.lt.s32.totalorder %s862_s29, 9 }
  0x10   : > { %s1152_s0 = sld [smem:[#allocation22_spill]]  ;;  %p634_p10 = scmp.lt.s32.totalorder %s862_s29, 8 }
  0x11   : > { %s1151_s10 = scalar_select %p953_p6, 1, 0 }
  0x12   : > { %p961_p8 = pnand %p592_p5, %p214_p7  ;;  %s1154_s1 = sld [smem:[#allocation23_spill]] }
  0x13   : > { %p977_p12 = pnand %p634_p10, %p95_p4 }
  0x14   : > { %s1153_s14 = scalar_select %p961_p8, 1, 0 }
  0x15   : > { %p621_p9 = pneg %p961_p8 }
  0x16   : > { %s227_s13 = sshll.u32 %s1152_s0, 4  ;;  %s228_s13 = int_to_ptr.vmem [resolvable:$true] %s227_s13 }
  0x17   : > { %p973_p11 = pnand %p621_p9, %p946_p3  ;;  %s692_s20 = scalar_lea.vmem %s228_s13, 16 }
  0x18   : > { %s238_s17 = sshll.u32 %s1154_s1, 4  ;;  %p693_p13 = scmp.ne.s32.totalorder %s228_s13, %s692_s20  ;;  %s239_s17 = int_to_ptr.vmem [resolvable:$true] %s238_s17 }
  0x19   : > { %s1156_s19 = scalar_select %p977_p12, 1, 0 }
  0x1a   : > { %p694_p0 = pneg %p973_p11  ;;  %p700_p5 = scmp.lt.s32.totalorder %s228_s13, %s228_s13 }
  0x1b   : > { %p701_p7 = scmp.lt.s32.totalorder %s692_s20, %s692_s20 }
  0x1c   : > { %p695_p1 = pnand %p694_p0, %p693_p13 }
  0x1d   : > { %p702_p6 = por %p701_p7, %p700_p5 }
  0x1e   : > { %p696_p2 = pneg %p695_p1 }
  0x20   : > { %p703_p8 = pnand %p702_p6, %p696_p2 }
  0x22   : > { %706 = shalt.err (!%p703_p8)
}
  0x23   : > { %s864_s21 = smov [#allocation5]   ;;  %s707_s22 = scalar_lea.vmem %s239_s17, 16 }
  0x24   : > { %624 = dma.vmem_to_smem (!%p973_p11), %s228_s13, 16, %s864_s21, [#allocation7]  }
  0x25   : > { %p708_p4 = scmp.ne.s32.totalorder %s239_s17, %s707_s22  ;;  %p715_p3 = scmp.lt.s32.totalorder %s239_s17, %s239_s17 }
  0x26   : > { %p716_p12 = scmp.lt.s32.totalorder %s707_s22, %s707_s22 }
  0x27   : > { %p710_p9 = pnand %p708_p4, %p694_p0 }
  0x28   : > { %p717_p13 = por %p716_p12, %p715_p3 }
  0x29   : > { %p711_p10 = pneg %p710_p9 }
  0x2b   : > { %p718_p1 = pnand %p717_p13, %p711_p10 }
  0x2d   : > { %721 = shalt.err (!%p718_p1)
}
  0x2e   : > { %s865_s23 = smov [#allocation8]   ;;  %s249_s24 = sand.u32 1, %s850_s26  }
  0x2f   : > { %627 = dma.vmem_to_smem (!%p973_p11), %s239_s17, 16, %s865_s23, [#allocation9]  }
  0x30   : > { %s35_s30 = sadd.s32 1, %s858_s28  ;;  %s596_s11 = sshll.u32 %s249_s24, 4 }
  0x31   : > { %p37_p6 = scmp.ge.s32.totalorder %s35_s30, 8  ;;  %s610_s12 = sshll.u32 %s858_s28, 8 }
  0x32   : > { %s1157_s3 = sld [smem:[#allocation24_spill]]  ;;  %s253_s18 = scalar_lea.vmem [#allocation10], %s596_s11 }
  0x33   : > { %s1170_s30 = smov (%p37_p6, %s35_s30), 0  ;;  %s262_s17 = sshll.u32 %s253_s18, 4  ;;  %s999_s17 = int_to_ptr.vmem [resolvable:$true] %s262_s17 }
  0x34   : > { %s81_s20 = ssub.s32 %s858_s28, %s1170_s30  ;;  %s1006_s22 = scalar_lea.sflag [#allocation6], %s249_s24 }
  0x35   : > { %p84_p3 = scmp.eq.s32.totalorder %s81_s20, 0  ;;  %p1158_p11 = scmp.ne.s32.totalorder %s1156_s19, 0 }
  0x37   : > { %s1004_s21 = scalar_select %p84_p3, %s850_s26, %s86_s8  }
  0x38   : > { %s995_s16 = scalar_lea.hbm %s1157_s3, %s610_s12  ;;  %p724_p12 = pneg %p1158_p11 }
  0x39   : > { %s722_s23 = scalar_lea.hbm %s995_s16, 256  ;;  %s727_s13 = scalar_lea.hbm %s1157_s3, 2048 }
  0x3a   : > { %p723_p8 = scmp.ne.s32.totalorder %s995_s16, %s722_s23  ;;  %p728_p5 = scmp.lt.u32.totalorder %s995_s16, %s1157_s3 }
  0x3b   : > { %p729_p7 = scmp.lt.u32.totalorder %s727_s13, %s722_s23  ;;  %p731_p9 = scmp.lt.u32.totalorder %s722_s23, %s995_s16 }
  0x3c   : > { %p725_p0 = pnand %p724_p12, %p723_p8 }
  0x3d   : > { %p730_p4 = por %p729_p7, %p728_p5 }
  0x3e   : > { %p726_p2 = pneg %p725_p0 }
  0x3f   : > { %p732_p10 = por %p731_p9, %p730_p4 }
  0x41   : > { %p733_p13 = pnand %p732_p10, %p726_p2 }
  0x43   : > { %736 = shalt.err (!%p733_p13)
}
  0x44   : > { %s737_s8 = scalar_lea.vmem %s999_s17, 256  ;;  %s866_s24 = smov [#allocation10]  }
  0x45   : > { %p738_p1 = scmp.ne.s32.totalorder %s999_s17, %s737_s8  ;;  %s742_s20 = sshll.u32 %s866_s24, 4  ;;  %s743_s20 = int_to_ptr.vmem [resolvable:$false] %s742_s20 }
  0x46   : > { %s744_s11 = scalar_lea.vmem %s743_s20, 512  ;;  %p745_p8 = scmp.lt.s32.totalorder %s999_s17, %s743_s20 }
  0x47   : > { %p740_p6 = pnand %p738_p1, %p724_p12  ;;  %p746_p0 = scmp.lt.s32.totalorder %s744_s11, %s737_s8 }
  0x49   : > { %p741_p3 = pneg %p740_p6  ;;  %p747_p5 = por %p746_p0, %p745_p8 }
  0x4b   : > { %p748_p7 = pnand %p747_p5, %p741_p3 }
  0x4d   : > { %751 = shalt.err (!%p748_p7)
}
  0x4e   : > { %s867_s23 = smov 128   ;;  %s868_s12 = smov 8  }
  0x4f   : > { %631 = dma.hbm_to_vmem [thread:$0]  (!%p1158_p11), %s995_s16, 256, %s999_s17, %s1006_s22, %s867_s23, %s867_s23, %s868_s12  }
  0x50   : > { %p1159_p12 = scmp.ne.s32.totalorder %s1153_s14, 0 }
  0x51   : > { %p1160_p2 = scmp.ne.s32.totalorder (!%p1159_p12), %s1150_s9, 0 }
  0x52   : > { %274 = sbr.rel (%p1159_p12) target bundleno = 157 (0x9d), region = 32 }
  0x59   : > { %825 = dma.done.wait (%p1160_p2), [#allocation7], 16  }
  0x5a   : > { %827 = vsyncadd (%p1160_p2), [#allocation7], 4294967280 }
  0x5b   : > { %829 = dma.done.wait (%p1160_p2), [#allocation9], 16  }
  0x5c   : > { %831 = vsyncadd (%p1160_p2), [#allocation9], 4294967280  ;;  %s284_s13 = sand.u32 1, %s846_s25   ;;  %p1161_p11 = scmp.ne.s32.totalorder %s1151_s10, 0 }
  0x5d   : > { %s602_s19 = sshll.u32 %s284_s13, 4  ;;  %s285_s16 = scalar_lea.sflag [#allocation6], %s284_s13 }
  0x5e   : > { %s288_s17 = scalar_lea.vmem [#allocation10], %s602_s19 }
  0x5f   : > { %833 = dma.done.wait (%p1161_p11), %s285_s16, 256  }
  0x60   : > { %835 = vsyncadd (%p1161_p11), %s285_s16, 4294967040 }
  0x61   : > { %293 = sfence }
  0x62   : > { %p326_p4 = scmp.lt.s32.totalorder %s854_s27, 7  ;;  %s344_s9 = sld [smem:[#allocation5 + %s854_s27]]  ;;  %v338_v0 = vld [vmem:[%s288_s17] sm:$0xff]  ;;  %v339_v1 = vld [vmem:[%s288_s17 + $0x8] sm:$0xff]  ;;  %v870_v5 = vmov 0.0  }
  0x63   : > { %s603_s14 = sshll.u32 %s854_s27, 4  ;;  %v379_v2 = vadd.f32 %v339_v1, %v338_v0  ;;  %s869_s10 = smov [#allocation2]  }
  0x64   : > { %s1053_s22 = scalar_select %p326_p4, %s854_s27, 7 }
  0x65   : > { %s357_s15 = sshll.u32 %s869_s10, 4  ;;  %s1056_s18 = sld [smem:[#allocation8 + %s854_s27]]  ;;  %v380_v3 = vrot.slane %v379_v2, 4  ;;  %s358_s15 = int_to_ptr.vmem [resolvable:$true] %s357_s15 }
  0x66   : > { %s1070_s16 = scalar_lea.vmem %s1141_s7, %s1053_s22  ;;  %s871_s0 = smov [#allocation3]  }
  0x67   : > { %v381_v4 = vadd.f32 %v380_v3, %v379_v2  ;;  %377 = vst [vmem:[%s1070_s16] sm:$0x1] %v870_v5  ;;  %s372_s8 = sshll.u32 %s871_s0, 4  ;;  %s754_s12 = scalar_lea.hbm %s1136_s2, 2048  ;;  %s1078_s8 = int_to_ptr.vmem [resolvable:$true] %s372_s8 }
  0x68   : > { %s347_s17 = sadd.s32 %s603_s14, %s344_s9 }
  0x69   : > { %s604_s10 = sshll.u32 %s347_s17, 4  ;;  %v382_v6 = vrot.slane %v381_v4, 2 }
  0x6a   : > { %s349_s11 = scalar_lea.hbm %s1136_s2, %s604_s10 }
  0x6b   : > { %s752_s23 = scalar_lea.hbm %s349_s11, 16  ;;  %p755_p10 = scmp.lt.u32.totalorder %s349_s11, %s1136_s2 }
  0x6c   : > { %p753_p9 = scmp.ne.s32.totalorder %s349_s11, %s752_s23  ;;  %p756_p13 = scmp.lt.u32.totalorder %s754_s12, %s752_s23 }
  0x6d   : > { %p758_p6 = scmp.lt.u32.totalorder %s752_s23, %s349_s11 }
  0x6e   : > { %p757_p1 = por %p756_p13, %p755_p10 }
  0x70   : > { %p759_p3 = por %p758_p6, %p757_p1 }
  0x72   : > { %p760_p8 = pnand %p759_p3, %p753_p9 }
  0x74   : > { %763 = shalt.err (!%p760_p8)  }
  0x75   : > { %s764_s0 = scalar_lea.vmem %s358_s15, 16  ;;  %p769_p5 = scmp.lt.s32.totalorder %s358_s15, %s358_s15 }
  0x76   : > { %p765_p0 = scmp.ne.s32.totalorder %s358_s15, %s764_s0  ;;  %p770_p7 = scmp.lt.s32.totalorder %s764_s0, %s764_s0 }
  0x78   : > { %p771_p12 = por %p770_p7, %p769_p5 }
  0x7a   : > { %p772_p2 = pnand %p771_p12, %p765_p0 }
  0x7c   : > { %775 = shalt.err (!%p772_p2)  }
  0x7d   : > { %360 = dma.hbm_to_vmem [thread:$0]  %s349_s11, 16, %s358_s15, [#allocation4]  ;;  %v383_v7 = vadd.f32 %v382_v6, %v381_v4 }
  0x7e   : > { %s361_s1 = sadd.s32 %s603_s14, %s1056_s18  ;;  %s334_s20 = scalar_lea.vmem %s1140_s6, %s1053_s22 }
  0x7f   : > { %s605_s17 = sshll.u32 %s361_s1, 4  ;;  %376 = vst [vmem:[%s334_s20] sm:$0x1] %v338_v0  ;;  %v384_v8 = vrot.slane %v383_v7, 1 }
  0x80   : > { %s363_s23 = scalar_lea.hbm %s1136_s2, %s605_s17 }
  0x81   : > { %s776_s13 = scalar_lea.hbm %s363_s23, 16  ;;  %p779_p4 = scmp.lt.u32.totalorder %s363_s23, %s1136_s2 }
  0x82   : > { %p777_p11 = scmp.ne.s32.totalorder %s363_s23, %s776_s13  ;;  %p780_p9 = scmp.lt.u32.totalorder %s754_s12, %s776_s13 }
  0x83   : > { %p782_p13 = scmp.lt.u32.totalorder %s776_s13, %s363_s23 }
  0x84   : > { %p781_p10 = por %p780_p9, %p779_p4 }
  0x86   : > { %p783_p1 = por %p782_p13, %p781_p10 }
  0x88   : > { %p784_p6 = pnand %p783_p1, %p777_p11 }
  0x8a   : > { %787 = shalt.err (!%p784_p6)  }
  0x8b   : > { %s788_s27 = scalar_lea.vmem %s1078_s8, 16  ;;  %p793_p8 = scmp.lt.s32.totalorder %s1078_s8, %s1078_s8 }
  0x8c   : > { %p789_p3 = scmp.ne.s32.totalorder %s1078_s8, %s788_s27  ;;  %p794_p0 = scmp.lt.s32.totalorder %s788_s27, %s788_s27 }
  0x8e   : > { %p795_p5 = por %p794_p0, %p793_p8 }
  0x90   : > { %p796_p7 = pnand %p795_p5, %p789_p3 }
  0x92   : > { %799 = shalt.err (!%p796_p7)  }
  0x93   : > { %375 = dma.hbm_to_vmem [thread:$0]  %s363_s23, 16, %s1078_s8, [#allocation4 + $0x1]  ;;  %v378_v9 = vld [vmem:[%s1070_s16] sm:$0x1]  ;;  %v385_v10 = vadd.f32 %v384_v8, %v383_v7 }
  0x95   : > { %v386_v11 = vadd.f32 %v385_v10, %v378_v9 }
  0x97   : > { %387 = vst [vmem:[%s1070_s16] sm:$0x1] %v386_v11 }
  0x98   : > { %836 = dma.done.wait [#allocation4], 16 }
  0x99   : > { %837 = vsyncadd [#allocation4], 4294967280 }
  0x9a   : > { %838 = dma.done.wait [#allocation4 + $0x1], 16 }
  0x9b   : > { %839 = vsyncadd [#allocation4 + $0x1], 4294967280  ;;  %v398_v12 = vld [vmem:[#allocation2] sm:$0x1]  ;;  %v400_v13 = vld [vmem:[#allocation3] sm:$0x1]  ;;  %s1162_s12 = scalar_lea.vmem %s1138_s4, %s1053_s22  ;;  %s1163_s8 = scalar_lea.vmem %s1139_s5, %s1053_s22 }
  0x9c   : > { %399 = vst [vmem:[%s1162_s12] sm:$0x1] %v398_v12  ;;  %401 = vst [vmem:[%s1163_s8] sm:$0x1] %v400_v13 }
  0x9d PF: > { %s23_s29 = sadd.s32 1, %s862_s29   ;;  %s1164_s24 = smov %s846_s25 }
  0x9e   : > { %p20_p12 = scmp.ge.s32.totalorder %s23_s29, 10   ;;  %s1165_s25 = smov %s850_s26 }
  0x9f   : > { %s1166_s26 = smov %s1004_s21  ;;  %s1167_s27 = smov %s858_s28 }
  0xa0   : > { %s1168_s28 = smov %s1170_s30  ;;  %22 = sbr.rel (!%p20_p12) target bundleno = 10 (0xa), region = 138 }
  0xa7   :  { %455 = vsyncpa [#allocation6], 1 }
  0xa8   :  { %457 = vsyncpa [#allocation6 + $0x1], 1 }
  0xa9   :  { %458 = vsyncpa [#allocation7], 1 }
  0xaa   :  { %460 = vsyncpa [#allocation7 + $0x1], 1 }
  0xab   :  { %461 = vsyncpa [#allocation9], 1 }
  0xac   :  { %462 = vsyncmov [#allocation4] }
  0xaf   :  { %s463_s22 = vpop.sfrf %462 }
  0xb0   :  { %p608_p2 = scmp.ne.s32.totalorder %s463_s22, 0 }
  0xb2   :  { %467 = shalt.err (%p608_p2)  }
  0xb3   :  { %469 = vsyncmov [#allocation4 + $0x1] }
  0xb6   :  { %s470_s16 = vpop.sfrf %469 }
  0xb7   :  { %p609_p11 = scmp.ne.s32.totalorder %s470_s16, 0 }
  0xb9   :  { %474 = shalt.err (%p609_p11)  }

// kernel: cp_contrastive_head.3
= control target key start
LH: loop header
LB: loop body
LE: loop exit
PB: predicated region body
PF: predicated region fallthrough
CT: control target
= control target key end

     0   :  { %s308_s0 = inlined_call_operand.vmem [shape: f32[8,128], index: 0, kind: input, shape index: {}]   ;;  %s309_s1 = inlined_call_operand.vmem [shape: f32[8,128], index: 1, kind: input, shape index: {}]   ;;  %s310_s2 = inlined_call_operand.vmem [shape: f32[8,128], index: 2, kind: input, shape index: {}]   ;;  %s311_s3 = inlined_call_operand.vmem [shape: f32[8,128], index: 3, kind: input, shape index: {}]   ;;  %s312_s4 = inlined_call_operand.vmem [shape: f32[8,8], index: 4, kind: input, shape index: {}]   ;;  %s313_s5 = inlined_call_operand.<no memory space> [shape: f32[1], index: 5, kind: input, shape index: {}]   ;;  %s314_s6 = inlined_call_operand.hbm [shape: f32[1,1], index: 6, kind: output, shape index: {}]  }
   0x1   :  { %v27_v0 = vld [vmem:[%s310_s2] sm:$0xff] }
   0x2   :  { %v28_v1 = vld [vmem:[%s311_s3] sm:$0xff]  ;;  %v41_v4 = vmul.f32 %v27_v0, %v27_v0 }
   0x3   :  { %v25_v2 = vld [vmem:[%s308_s0] sm:$0xff]  ;;  %v29_v3 = vmul.f32 0.0625, %v28_v1 }
   0x4   :  { %v26_v5 = vld [vmem:[%s309_s1] sm:$0xff] }
   0x5   :  { %12 = vsyncpa [#allocation4], 0  ;;  %v42_v6 = vmul.f32 %v29_v3, %v29_v3  ;;  %v32_v7 = vmul.f32 %v25_v2, %v25_v2  ;;  %v33_v8 = vmul.f32 %v26_v5, %v26_v5  ;;  %v39_v18 = vstv %s313_s5  ;;  %v30_v46 = vld [vmem:[%s312_s4] sm:$0xff]  ;;  %s236_s4 = smov [#allocation3]  }
   0x6   :  { %vm122_vm0 = vcmask 64512   ;;  %s191_s5 = sshll.u32 %s236_s4, 4  ;;  %vm183_vm1 = vcmask 0   ;;  %s192_s5 = int_to_ptr.vmem [resolvable:$true] %s191_s5 }
   0x7   :  { %v43_v9 = vadd.f32 %v42_v6, %v41_v4  ;;  %v34_v10 = vadd.f32 %v33_v8, %v32_v7  ;;  %s212_s29 = scalar_lea.vmem %s192_s5, 16  ;;  %s216_s30 = scalar_lea.vmem %s192_s5, 32 }
   0x8   :  { %p213_p0 = scmp.ne.s32.totalorder %s192_s5, %s212_s29  ;;  %p217_p1 = scmp.lt.s32.totalorder %s192_s5, %s192_s5 }
   0x9   :  { %44 = vadd.xlane.f32.xlu0 %v43_v9  ;;  %p218_p2 = scmp.lt.s32.totalorder %s216_s30, %s212_s29 }
   0xb   :  { %p219_p3 = por %p218_p2, %p217_p1 }
   0xd   :  { %35 = vadd.xlane.f32.xlu0 %v34_v10  ;;  %p220_p4 = pnand %p219_p3, %p213_p0 }
  0x96   :  { %v45_v11 = vpop.xlane.xlu0 %44 }
  0x97   :  { %v46_v12 = vadd.f32 1e-12, %v45_v11 }
  0x99   :  { %200 = vrsqrt.f32 %v46_v12 }
  0x9a   :  { %v36_v13 = vpop.xlane.xlu0 %35 }
  0x9b   :  { %v37_v14 = vadd.f32 1e-12, %v36_v13 }
  0x9d   :  { %202 = vrsqrt.f32 %v37_v14 }
  0xa3   :  { %v201_v15 = vpop.eup %200 }
  0xa4   :  { %v51_v16 = vmul.f32 %v201_v15, %v29_v3  ;;  %v50_v17 = vmul.f32 %v201_v15, %v27_v0 }
  0xa6   :  { %52 = vmatprep.subr.mxu0 %v51_v16 }
  0xa7   :  { %v203_v19 = vpop.eup %202  ;;  %53 = vmatpush1.xpose.msra.mxu0 %v50_v17 }
  0xa8   :  { %v40_v20 = vmul.f32 %v203_v19, %v39_v18 }
  0xaa   :  { %v49_v21 = vmul.f32 %v40_v20, %v26_v5  ;;  %v48_v22 = vmul.f32 %v40_v20, %v25_v2 }
  0xac   :  { %116 = vmatprep.mubr.f32.mxu0 %v49_v21 }
  0xad   :  { %117 = vmatmul.mubr.f32.vlgmr.msra.gmra.mrb[0].mxu0 %v48_v22 }
 0x180   :  { %v118_v23 = vpop.f32.mrb[0].mxu0 }
 0x181   :  { %v120_v24 = vpop.f32.mrb[1].mxu0  ;;  %v123_v25 = vsel %vm122_vm0, %v118_v23, -inf }
 0x182   :  { %124 = vmax.xlane.f32.xlu1 %v123_v25  ;;  %v148_v26 = vrot.slane %v123_v25, 4 }
 0x184   :  { %v149_v27 = vmax.f32 %v123_v25, %v148_v26 }
 0x186   :  { %v150_v28 = vrot.slane %v149_v27, 2 }
 0x188   :  { %v151_v29 = vmax.f32 %v149_v27, %v150_v28 }
 0x18a   :  { %v152_v30 = vrot.slane %v151_v29, 1 }
 0x18c   :  { %v153_v31 = vmax.f32 %v151_v29, %v152_v30 }
 0x18e   :  { %v154_v32 = vsub.f32 %v118_v23, %v153_v31 }
 0x190   :  { %v155_v33 = vmul.f32 1.442695, %v154_v32 }
 0x192   :  { %204 = vpow2.f32 %v155_v33 }
 0x19c   :  { %v205_v34 = vpop.eup %204 }
 0x19d   :  { %v157_v35 = vsel %vm122_vm0, %v205_v34, 0.0 }
 0x19e   :  { %v158_v36 = vrot.slane %v157_v35, 4 }
 0x1a0   :  { %v159_v37 = vadd.f32 %v158_v36, %v157_v35 }
 0x1a2   :  { %v160_v38 = vrot.slane %v159_v37, 2 }
 0x1a4   :  { %v161_v39 = vadd.f32 %v160_v38, %v159_v37 }
 0x1a6   :  { %v162_v40 = vrot.slane %v161_v39, 1 }
 0x1a8   :  { %v163_v41 = vadd.f32 %v162_v40, %v161_v39 }
 0x1aa   :  { %206 = vlog2.f32 %v163_v41 }
 0x1b4   :  { %v207_v42 = vpop.eup %206 }
 0x1b5   :  { %v165_v43 = vmul.f32 0.6931472, %v207_v42 }
 0x1b7   :  { %v166_v44 = vadd.f32 %v165_v43, %v153_v31 }
 0x1b9   :  { %v167_v45 = vsub.f32 %v118_v23, %v166_v44 }
 0x1bb   :  { %v168_v47 = vmul.f32 %v167_v45, %v30_v46 }
 0x1bd   :  { %v169_v48 = vsel %vm122_vm0, %v168_v47, 0.0 }
 0x1be   :  { %v170_v49 = vrot.slane %v169_v48, 4 }
 0x1c0   :  { %v171_v51 = vadd.f32 %v170_v49, %v169_v48 }
 0x1c2   :  { %v172_v54 = vrot.slane %v171_v51, 2 }
 0x1c4   :  { %v173_v55 = vadd.f32 %v172_v54, %v171_v51 }
 0x1c6   :  { %v174_v56 = vrot.slane %v173_v55, 1 }
 0x1c8   :  { %v175_v59 = vadd.f32 %v174_v56, %v173_v55 }
 0x1ca   :  { %v176_v60 = vsel %vm122_vm0, %v175_v59, 0.0 }
 0x20f   :  { %v125_v50 = vpop.xlane.xlu1 %124 }
 0x210   :  { %v126_v52 = vsub.f32 %v118_v23, %v125_v50 }
 0x212   :  { %v127_v53 = vmul.f32 1.442695, %v126_v52 }
 0x214   :  { %208 = vpow2.f32 %v127_v53 }
 0x21e   :  { %v209_v57 = vpop.eup %208 }
 0x21f   :  { %v129_v58 = vsel %vm122_vm0, %v209_v57, 0.0 }
 0x220   :  { %130 = vadd.xlane.f32.xlu1 %v129_v58 }
 0x224   :  { %177 = vadd.xlane.f32.xlu1 %v176_v60 }
 0x2ad   :  { %v131_v61 = vpop.xlane.xlu1 %130 }
 0x2ae   :  { %210 = vlog2.f32 %v131_v61 }
 0x2b1   :  { %v178_v9 = vpop.xlane.xlu1 %177 }
 0x2b2   :  { %v179_v11 = vsub.f32 0.0, %v178_v9 }
 0x2b4   :  { %v180_v14 = vmul.f32 0.125, %v179_v11 }
 0x2b8   :  { %v211_v62 = vpop.eup %210 }
 0x2b9   :  { %v133_v63 = vmul.f32 0.6931472, %v211_v62 }
 0x2bb   :  { %v134_v0 = vadd.f32 %v133_v63, %v125_v50 }
 0x2bd   :  { %v135_v1 = vsub.f32 %v118_v23, %v134_v0 }
 0x2bf   :  { %v136_v2 = vmul.f32 %v135_v1, %v30_v46 }
 0x2c1   :  { %v137_v3 = vsel %vm122_vm0, %v136_v2, 0.0 }
 0x2c2   :  { %138 = vadd.xlane.f32.xlu0 %v137_v3 }
 0x34f   :  { %v139_v4 = vpop.xlane.xlu0 %138 }
 0x350   :  { %v140_v5 = vrot.slane %v139_v4, 4 }
 0x352   :  { %v141_v6 = vadd.f32 %v140_v5, %v139_v4 }
 0x354   :  { %v142_v7 = vrot.slane %v141_v6, 2 }
 0x356   :  { %v143_v8 = vadd.f32 %v142_v7, %v141_v6 }
 0x358   :  { %v144_v10 = vrot.slane %v143_v8, 1 }
 0x35a   :  { %v145_v12 = vadd.f32 %v144_v10, %v143_v8 }
 0x35c   :  { %v146_v13 = vsub.f32 0.0, %v145_v12 }
 0x35e   :  { %v147_v15 = vmul.f32 0.125, %v146_v13 }
 0x360   :  { %v181_v16 = vadd.f32 %v180_v14, %v147_v15 }
 0x362   :  { %v182_v17 = vmul.f32 0.5, %v181_v16 }
 0x364   :  { %184 = vst.msk [vmem:[#allocation3] sm:$0x1] %vm183_vm1, %v182_v17 }
 0x365   :  { %223 = shalt.err (!%p220_p4)
}
 0x366   :  { %s224_s9 = scalar_lea.hbm %s314_s6, 16 }
 0x367   :  { %p225_p5 = scmp.ne.s32.totalorder %s314_s6, %s224_s9  ;;  %p228_p6 = scmp.lt.u32.totalorder %s224_s9, %s314_s6 }
 0x369   :  { %p230_p7 = pnand %p228_p6, %p225_p5 }
 0x36b   :  { %233 = shalt.err (!%p230_p7)
}
 0x36c   :  { %194 = dma.vmem_to_hbm [thread:$0]  %s192_s5, 16, %s314_s6, [#allocation4]  }
 0x36d   :  { %234 = dma.done.wait [#allocation4], 16  }
 0x36e   :  { %235 = vsyncadd [#allocation4], 4294967280 }
 0x36f   :  { %198 = vsyncpa [#allocation4], 1 }

</bundles_post_ra>
